<compile_context>
chip_gen: v6e
topology: v6e:2x2x1
jax: 0.10.0
libtpu: 0.0.40
codegen_flags: <defaults>
</compile_context>

<pallas_src>
import functools

import jax
import jax.numpy as jnp
from jax import lax
from jax.experimental import pallas as pl
from jax.experimental.pallas import tpu as pltpu


# ---------------------------------------------------------------------------
# Kernel
# ---------------------------------------------------------------------------
def _make_kernel(t_hw, lane_acc, tn, C):
    """Builds the kernel closure for static tile parameters."""
    n_iters = t_hw // lane_acc

    def kernel(x_ref, w1_ref, b1_ref, w2_ref, b2_ref, o_ref, acc_ref):
        # x_ref:  (tn*C, t_hw)     streamed spatial tile (rows = samples*channels)
        # w1_ref: (C, K)  (1/HW folded in)   b1_ref: (1, K)
        # w2_ref: (K, K)                     b2_ref: (1, K)
        # o_ref:  (tn, K)
        # acc_ref:(tn*C, lane_acc) f32 lane-resident pooled-sum accumulator
        hw_id = pl.program_id(1)

        @pl.when(hw_id == 0)
        def _():
            acc_ref[...] = jnp.zeros_like(acc_ref)

        # Pure-VPU accumulation: one vadd per x vreg, f32 upcast per chunk.
        acc = acc_ref[...]
        if n_iters <= 8:
            for j in range(n_iters):
                chunk = x_ref[:, pl.ds(j * lane_acc, lane_acc)]
                acc = acc + chunk.astype(jnp.float32)
        else:
            def body(j, a):
                start = pl.multiple_of(j * lane_acc, lane_acc)
                chunk = x_ref[:, pl.ds(start, lane_acc)]
                return a + chunk.astype(jnp.float32)
            acc = lax.fori_loop(0, n_iters, body, acc)
        acc_ref[...] = acc

        # fc1 -> relu -> fc2 -> softmax only on the final reduction step.
        @pl.when(hw_id == pl.num_programs(1) - 1)
        def _():
            # One-time cross-lane reduce + regroup (tn*C, lane_acc) -> (tn, C).
            pooled = jnp.sum(acc_ref[...].reshape(tn, C, lane_acc), axis=-1)
            h = jnp.dot(pooled, w1_ref[...],
                        preferred_element_type=jnp.float32) + b1_ref[...]
            h = jnp.maximum(h, 0.0)                               # (tn, K)
            logits = jnp.dot(h, w2_ref[...],
                             preferred_element_type=jnp.float32) + b2_ref[...]
            m = jnp.max(logits, axis=1, keepdims=True)
            e = jnp.exp(logits - m)
            s = jnp.sum(e, axis=1, keepdims=True)
            o_ref[...] = (e / s).astype(o_ref.dtype)

    return kernel


# ---------------------------------------------------------------------------
# Tiling / VMEM heuristics
# ---------------------------------------------------------------------------
def _vmem_capacity_bytes():
    try:
        info = pltpu.get_tpu_info()
        cap = getattr(info, "vmem_capacity_bytes", None)
        if cap:
            return int(cap)
    except Exception:
        pass
    return 64 * 2**20  # conservative default (v7x per-TC VMEM)


def _pick_tn(N, C):
    """Batch tile (in samples). tn*C must be a multiple of 8 or the full NC dim."""
    cands = [t for t in range(1, N + 1)
             if N % t == 0 and ((t * C) % 8 == 0 or t * C == N * C)]
    # Prefer >= 2 N-blocks so the "parallel" axis can shard across v7x's 2 TCs.
    pool = [t for t in cands if N // t >= 2] or cands
    # Keep per-tile row count modest so the lane-resident accumulator stays cheap.
    capped = [t for t in pool if t * C <= 512]
    return max(capped) if capped else min(pool)


def _pick_t_hw(HW_pad, rows_pad, itemsize, budget):
    """Largest multiple-of-128 divisor of HW_pad fitting the per-buffer budget.
    Falls back to the MINIMUM tile (128), never to the full HW dimension."""
    best = 128
    cand = 128
    while cand <= HW_pad:
        if HW_pad % cand == 0 and rows_pad * cand * itemsize <= budget:
            best = cand
        cand += 128
    return best


# ---------------------------------------------------------------------------
# Wrapper
# ---------------------------------------------------------------------------
def attention2d_forward(x, fc1_w, fc1_b, fc2_w, fc2_b):
    """x: (N, C, H, W); fc1_w: (K, C, 1, 1); fc1_b: (K,); fc2_w: (K, K, 1, 1); fc2_b: (K,)."""
    N, C, H, W = x.shape
    K = fc1_w.shape[0]
    HW = H * W
    itemsize = jnp.dtype(x.dtype).itemsize

    # Sublane-dense 2-D layout; pad HW up to a multiple of 128 (zeros are
    # neutral for the pooled SUM since the 1/HW scale uses the true HW).
    HW_pad = -(-HW // 128) * 128
    x2 = x.reshape(N * C, HW)
    if HW_pad != HW:
        x2 = jnp.pad(x2, ((0, 0), (0, HW_pad - HW)))

    # Generation-aware budgets (v5e/v6e: 128 MiB VMEM, v7x: 64 MiB per TC).
    cap = _vmem_capacity_bytes()
    per_buf_budget = min(24 * 2**20, max(2 * 2**20, int(0.30 * cap)))

    sub = 32 // itemsize                      # sublane packing: f32 8, bf16 16, i8 32
    tn = _pick_tn(N, C)
    t_nc = tn * C
    rows_pad = -(-t_nc // sub) * sub
    t_hw = _pick_t_hw(HW_pad, rows_pad, itemsize, per_buf_budget)
    grid = (N // tn, HW_pad // t_hw)          # HW reduction axis MUST stay last.
    lane_acc = max(a for a in (512, 256, 128) if t_hw % a == 0)

    # Fold the 1/HW mean scale into w1; pre-cast params to f32 once here.
    w1_t = (fc1_w.reshape(K, C).T / float(HW)).astype(jnp.float32)   # (C, K)
    w2_t = fc2_w.reshape(K, K).T.astype(jnp.float32)                 # (K, K)
    b1_2 = fc1_b.reshape(1, K).astype(jnp.float32)
    b2_2 = fc2_b.reshape(1, K).astype(jnp.float32)

    # VMEM limit sized from the real (sublane-padded) footprint, capped below
    # physical capacity so the same wrapper works on v5e/v6e/v7x.
    x_buf = 2 * rows_pad * t_hw * itemsize                 # double-buffered x tiles
    acc_buf = (-(-t_nc // 8) * 8) * lane_acc * 4
    small = 2 * ((C * K + K * K + 2 * K) * 4 + tn * max(K, 128) * itemsize)
    footprint = x_buf + acc_buf + small + (2 << 20)
    vmem_limit = int(min(0.9 * cap, max(footprint, 32 * 2**20)))

    kernel = _make_kernel(t_hw, lane_acc, tn, C)

    grid_spec = pltpu.PrefetchScalarGridSpec(
        num_scalar_prefetch=0,
        grid=grid,
        in_specs=[
            pl.BlockSpec((t_nc, t_hw), lambda n, s: (n, s)),
            pl.BlockSpec((C, K), lambda n, s: (0, 0)),
            pl.BlockSpec((1, K), lambda n, s: (0, 0)),
            pl.BlockSpec((K, K), lambda n, s: (0, 0)),
            pl.BlockSpec((1, K), lambda n, s: (0, 0)),
        ],
        out_specs=pl.BlockSpec((tn, K), lambda n, s: (n, 0)),
        scratch_shapes=[pltpu.VMEM((t_nc, lane_acc), jnp.float32)],
    )

    return pl.pallas_call(
        kernel,
        out_shape=jax.ShapeDtypeStruct((N, K), x.dtype),
        grid_spec=grid_spec,
        compiler_params=pltpu.CompilerParams(
            # N-blocks parallel (megacore); HW is the resident-output reduction
            # axis -- it must remain the LAST grid axis and stay "arbitrary".
            dimension_semantics=("parallel", "arbitrary"),
            vmem_limit_bytes=vmem_limit,
        ),
    )(x2, w1_t, b1_2, w2_t, b2_2)


# ---------------------------------------------------------------------------
# Pure-JAX reference and test
# ---------------------------------------------------------------------------
def attention2d_reference(x, fc1_w, fc1_b, fc2_w, fc2_b):
    N, C, H, W = x.shape
    K = fc1_w.shape[0]
    pooled = jnp.mean(x.astype(jnp.float32), axis=(2, 3))          # (N, C)
    h = jnp.maximum(pooled @ fc1_w.reshape(K, C).T + fc1_b, 0.0)   # (N, K)
    logits = h @ fc2_w.reshape(K, K).T + fc2_b                     # (N, K)
    return jax.nn.softmax(logits, axis=1).astype(x.dtype)


if __name__ == "__main__":
    # Small shapes consistent with the module: in_planes=4, K=8, batch=2, spatial=16.
    N, C, H, W, K = 2, 4, 16, 16, 8

    key = jax.random.PRNGKey(0)
    kx, k1w, k1b, k2w, k2b = jax.random.split(key, 5)

    x = jax.random.normal(kx, (N, C, H, W), dtype=jnp.float32)
    # Conv2d(in, out, 1) -> weight (out, in, 1, 1), bias (out,)
    fc1_w = jax.random.normal(k1w, (K, C, 1, 1), dtype=jnp.float32) * 0.1
    fc1_b = jax.random.normal(k1b, (K,), dtype=jnp.float32) * 0.1
    fc2_w = jax.random.normal(k2w, (K, K, 1, 1), dtype=jnp.float32) * 0.1
    fc2_b = jax.random.normal(k2b, (K,), dtype=jnp.float32) * 0.1

    out = attention2d_forward(x, fc1_w, fc1_b, fc2_w, fc2_b)
    out = jax.block_until_ready(out)

    ref = attention2d_reference(x, fc1_w, fc1_b, fc2_w, fc2_b)
    assert out.shape == (N, K)
    assert jnp.allclose(out, ref, atol=1e-5, rtol=1e-5), "mismatch vs reference"
    # rows sum to 1 (softmax)
    assert jnp.allclose(jnp.sum(out, axis=1), jnp.ones((N,)), atol=1e-5)

    print("KERNEL_OK")
</pallas_src>

<mosaic_0001>
module attributes {stable_mosaic.version = 11 : i64} {
  func.func @kernel(%arg0: i32, %arg1: i32, %arg2: memref<8x256xf32, #tpu.memory_space<vmem>>, %arg3: memref<4x8xf32, #tpu.memory_space<vmem>>, %arg4: memref<1x8xf32, #tpu.memory_space<vmem>>, %arg5: memref<8x8xf32, #tpu.memory_space<vmem>>, %arg6: memref<1x8xf32, #tpu.memory_space<vmem>>, %arg7: memref<2x8xf32, #tpu.memory_space<vmem>>, %arg8: memref<8x256xf32, #tpu.memory_space<vmem>>) attributes {dimension_semantics = [#tpu.dimension_semantics<parallel>, #tpu.dimension_semantics<arbitrary>], iteration_bounds = array<i64: 1, 1>, scalar_prefetch = 0 : i64, scratch_operands = 1 : i64, tpu.core_type = #tpu.core_type<tc>, window_params = [{transform_indices = @transform_0, window_bounds = array<i64: 8, 256>}, {pipeline_mode = #tpu.pipeline_mode<synchronous>, transform_indices = @transform_1, window_bounds = array<i64: 4, 8>}, {pipeline_mode = #tpu.pipeline_mode<synchronous>, transform_indices = @transform_2, window_bounds = array<i64: 1, 8>}, {pipeline_mode = #tpu.pipeline_mode<synchronous>, transform_indices = @transform_3, window_bounds = array<i64: 8, 8>}, {pipeline_mode = #tpu.pipeline_mode<synchronous>, transform_indices = @transform_4, window_bounds = array<i64: 1, 8>}, {transform_indices = @transform_5, window_bounds = array<i64: 2, 8>}]} {
    %c0_i32 = arith.constant 0 : i32
    %0 = arith.cmpi eq, %arg1, %c0_i32 : i32
    %1 = arith.extui %0 : i1 to i32
    %c0_i32_0 = arith.constant 0 : i32
    %2 = arith.cmpi ne, %1, %c0_i32_0 : i32
    scf.if %2 {
      %cst = arith.constant 0.000000e+00 : f32
      %10 = vector.broadcast %cst : f32 to vector<8x256xf32>
      %c0_8 = arith.constant 0 : index
      %c0_9 = arith.constant 0 : index
      %11 = vector.load %arg8[%c0_8, %c0_9] : memref<8x256xf32, #tpu.memory_space<vmem>>, vector<8x256xf32>
      tpu.vector_store %arg8[%c0_8, %c0_9], %10 {strides = array<i32>} : memref<8x256xf32, #tpu.memory_space<vmem>>, vector<8x256xf32>,
    } else {
    }
    %c0 = arith.constant 0 : index
    %c0_1 = arith.constant 0 : index
    %3 = vector.load %arg8[%c0, %c0_1] : memref<8x256xf32, #tpu.memory_space<vmem>>, vector<8x256xf32>
    %c0_2 = arith.constant 0 : index
    %c0_3 = arith.constant 0 : index
    %4 = vector.load %arg2[%c0_2, %c0_3] : memref<8x256xf32, #tpu.memory_space<vmem>>, vector<8x256xf32>
    %5 = arith.addf %3, %4 : vector<8x256xf32>
    %c0_4 = arith.constant 0 : index
    %c0_5 = arith.constant 0 : index
    %6 = vector.load %arg8[%c0_4, %c0_5] : memref<8x256xf32, #tpu.memory_space<vmem>>, vector<8x256xf32>
    tpu.vector_store %arg8[%c0_4, %c0_5], %5 {strides = array<i32>} : memref<8x256xf32, #tpu.memory_space<vmem>>, vector<8x256xf32>,
    %c0_i32_6 = arith.constant 0 : i32
    %7 = arith.cmpi eq, %arg1, %c0_i32_6 : i32
    %8 = arith.extui %7 : i1 to i32
    %c0_i32_7 = arith.constant 0 : i32
    %9 = arith.cmpi ne, %8, %c0_i32_7 : i32
    scf.if %9 {
      %c0_8 = arith.constant 0 : index
      %c0_9 = arith.constant 0 : index
      %10 = vector.load %arg8[%c0_8, %c0_9] : memref<8x256xf32, #tpu.memory_space<vmem>>, vector<8x256xf32>
      %11 = vector.shape_cast %10 : vector<8x256xf32> to vector<2x4x256xf32>
      %cst = arith.constant dense<0.000000e+00> : vector<2x4xf32>
      %12 = vector.multi_reduction <add>, %11, %cst [2] : vector<2x4x256xf32> to vector<2x4xf32>
      %c0_10 = arith.constant 0 : index
      %c0_11 = arith.constant 0 : index
      %13 = vector.load %arg3[%c0_10, %c0_11] : memref<4x8xf32, #tpu.memory_space<vmem>>, vector<4x8xf32>
      %cst_12 = arith.constant dense<0.000000e+00> : vector<2x8xf32>
      %14 = tpu.matmul %12, %13, %cst_12 {dimension_numbers = #tpu.dot_dimension_numbers<[1], [0], [0], [1], [0, 0, 1, 1], [], []>} : vector<2x4xf32>, vector<4x8xf32>, vector<2x8xf32> -> vector<2x8xf32>
      %c0_13 = arith.constant 0 : index
      %c0_14 = arith.constant 0 : index
      %15 = vector.load %arg4[%c0_13, %c0_14] : memref<1x8xf32, #tpu.memory_space<vmem>>, vector<1x8xf32>
      %16 = vector.broadcast %15 : vector<1x8xf32> to vector<2x8xf32>
      %17 = arith.addf %14, %16 : vector<2x8xf32>
      %cst_15 = arith.constant 0.000000e+00 : f32
      %18 = vector.broadcast %cst_15 : f32 to vector<2x8xf32>
      %19 = arith.maximumf %17, %18 : vector<2x8xf32>
      %c0_16 = arith.constant 0 : index
      %c0_17 = arith.constant 0 : index
      %20 = vector.load %arg5[%c0_16, %c0_17] : memref<8x8xf32, #tpu.memory_space<vmem>>, vector<8x8xf32>
      %cst_18 = arith.constant dense<0.000000e+00> : vector<2x8xf32>
      %21 = tpu.matmul %19, %20, %cst_18 {dimension_numbers = #tpu.dot_dimension_numbers<[1], [0], [0], [1], [0, 0, 1, 1], [], []>} : vector<2x8xf32>, vector<8x8xf32>, vector<2x8xf32> -> vector<2x8xf32>
      %c0_19 = arith.constant 0 : index
      %c0_20 = arith.constant 0 : index
      %22 = vector.load %arg6[%c0_19, %c0_20] : memref<1x8xf32, #tpu.memory_space<vmem>>, vector<1x8xf32>
      %23 = vector.broadcast %22 : vector<1x8xf32> to vector<2x8xf32>
      %24 = arith.addf %21, %23 : vector<2x8xf32>
      %cst_21 = arith.constant dense<0xFF800000> : vector<2xf32>
      %25 = vector.multi_reduction <maximumf>, %24, %cst_21 [1] : vector<2x8xf32> to vector<2xf32>
      %26 = vector.shape_cast %25 : vector<2xf32> to vector<2x1xf32>
      %27 = vector.broadcast %26 : vector<2x1xf32> to vector<2x8xf32>
      %28 = arith.subf %24, %27 : vector<2x8xf32>
      %29 = math.exp %28 : vector<2x8xf32>
      %cst_22 = arith.constant dense<0.000000e+00> : vector<2xf32>
      %30 = vector.multi_reduction <add>, %29, %cst_22 [1] : vector<2x8xf32> to vector<2xf32>
      %31 = vector.shape_cast %30 : vector<2xf32> to vector<2x1xf32>
      %32 = vector.broadcast %31 : vector<2x1xf32> to vector<2x8xf32>
      %33 = arith.divf %29, %32 : vector<2x8xf32>
      %c0_23 = arith.constant 0 : index
      %c0_24 = arith.constant 0 : index
      %34 = vector.load %arg7[%c0_23, %c0_24] : memref<2x8xf32, #tpu.memory_space<vmem>>, vector<2x8xf32>
      tpu.vector_store %arg7[%c0_23, %c0_24], %33 {strides = array<i32>} : memref<2x8xf32, #tpu.memory_space<vmem>>, vector<2x8xf32>,
    } else {
    }
    return
  }
  func.func @transform_0(%arg0: i32, %arg1: i32) -> (i32, i32) {
    %c0_i32 = arith.constant 0 : i32
    return %arg0, %arg1 : i32, i32
  }
  func.func @transform_1(%arg0: i32, %arg1: i32) -> (i32, i32) {
    %c0_i32 = arith.constant 0 : i32
    %c0_i32_0 = arith.constant 0 : i32
    %c0_i32_1 = arith.constant 0 : i32
    return %c0_i32, %c0_i32_0 : i32, i32
  }
  func.func @transform_2(%arg0: i32, %arg1: i32) -> (i32, i32) {
    %c0_i32 = arith.constant 0 : i32
    %c0_i32_0 = arith.constant 0 : i32
    %c0_i32_1 = arith.constant 0 : i32
    return %c0_i32, %c0_i32_0 : i32, i32
  }
  func.func @transform_3(%arg0: i32, %arg1: i32) -> (i32, i32) {
    %c0_i32 = arith.constant 0 : i32
    %c0_i32_0 = arith.constant 0 : i32
    %c0_i32_1 = arith.constant 0 : i32
    return %c0_i32, %c0_i32_0 : i32, i32
  }
  func.func @transform_4(%arg0: i32, %arg1: i32) -> (i32, i32) {
    %c0_i32 = arith.constant 0 : i32
    %c0_i32_0 = arith.constant 0 : i32
    %c0_i32_1 = arith.constant 0 : i32
    return %c0_i32, %c0_i32_0 : i32, i32
  }
  func.func @transform_5(%arg0: i32, %arg1: i32) -> (i32, i32) {
    %c0_i32 = arith.constant 0 : i32
    %c0_i32_0 = arith.constant 0 : i32
    return %arg0, %c0_i32 : i32, i32
  }
}

</mosaic_0001>

<bundles_post_ra>
// kernel: tpu_custom_call.1
= control target key start
LH: loop header
LB: loop body
LE: loop exit
PB: predicated region body
PF: predicated region fallthrough
CT: control target
= control target key end

     0   :  { %10 = vsyncpa [#allocation4], 0  ;;  %s489_s0 = inlined_call_operand.hbm [shape: f32[8,256], index: 0, kind: input, shape index: {}]   ;;  %s490_s1 = inlined_call_operand.hbm [shape: f32[4,8], index: 1, kind: input, shape index: {}]   ;;  %s491_s2 = inlined_call_operand.vmem [shape: f32[1,8], index: 2, kind: input, shape index: {}]   ;;  %s492_s3 = inlined_call_operand.hbm [shape: f32[8,8], index: 3, kind: input, shape index: {}]   ;;  %s493_s4 = inlined_call_operand.vmem [shape: f32[1,8], index: 4, kind: input, shape index: {}]   ;;  %s494_s5 = inlined_call_operand.hbm [shape: f32[2,8], index: 5, kind: output, shape index: {}]  }
   0x1   :  { %11 = vsyncpa [#allocation7], 0 }
   0x2   :  { %12 = vsyncpa [#allocation5], 0  ;;  %s427_s18 = smov [#allocation6]   ;;  %s428_s20 = smov [#allocation3]  }
   0x3   :  { %s29_s19 = sshll.u32 %s427_s18, 4  ;;  %s19_s21 = sshll.u32 %s428_s20, 4  ;;  %s30_s19 = int_to_ptr.vmem [resolvable:$true] %s29_s19  ;;  %s20_s21 = int_to_ptr.vmem [resolvable:$true] %s19_s21 }
   0x4   :  { %s349_s22 = scalar_lea.vmem %s30_s19, 64  ;;  %p354_p1 = scmp.lt.s32.totalorder %s30_s19, %s30_s19 }
   0x5   :  { %p350_p0 = scmp.ne.s32.totalorder %s30_s19, %s349_s22  ;;  %p355_p2 = scmp.lt.s32.totalorder %s349_s22, %s349_s22 }
   0x7   :  { %p356_p3 = por %p355_p2, %p354_p1 }
   0x9   :  { %p357_p4 = pnand %p356_p3, %p350_p0 }
   0xb   :  { %360 = shalt.err (!%p357_p4)
}
   0xc   :  { %32 = dma.hbm_to_vmem [thread:$0]  %s490_s1, 64, %s30_s19, [#allocation7]  }
   0xd   :  { %s369_s25 = scalar_lea.vmem %s20_s21, 256  ;;  %p374_p6 = scmp.lt.s32.totalorder %s20_s21, %s20_s21 }
   0xe   :  { %p370_p5 = scmp.ne.s32.totalorder %s20_s21, %s369_s25  ;;  %p375_p7 = scmp.lt.s32.totalorder %s369_s25, %s369_s25 }
  0x10   :  { %p376_p8 = por %p375_p7, %p374_p6 }
  0x12   :  { %p377_p9 = pnand %p376_p8, %p370_p5 }
  0x14   :  { %380 = shalt.err (!%p377_p9)
}
  0x15   :  { %22 = dma.hbm_to_vmem [thread:$0]  %s489_s0, 256, %s20_s21, [#allocation4]  }
  0x16   :  { %s429_s28 = smov [#allocation8]  }
  0x17   :  { %s41_s29 = sshll.u32 %s429_s28, 4  ;;  %s42_s29 = int_to_ptr.vmem [resolvable:$true] %s41_s29 }
  0x18   :  { %s389_s30 = scalar_lea.vmem %s42_s29, 128  ;;  %p394_p11 = scmp.lt.s32.totalorder %s42_s29, %s42_s29 }
  0x19   :  { %p390_p10 = scmp.ne.s32.totalorder %s42_s29, %s389_s30  ;;  %p395_p12 = scmp.lt.s32.totalorder %s389_s30, %s389_s30 }
  0x1b   :  { %p396_p13 = por %p395_p12, %p394_p11 }
  0x1d   :  { %p397_p0 = pnand %p396_p13, %p390_p10 }
  0x1f   :  { %400 = shalt.err (!%p397_p0)
}
  0x20   :  { %44 = dma.hbm_to_vmem [thread:$0]  %s492_s3, 128, %s42_s29, [#allocation7]  }
  0x21   :  { %421 = dma.done.wait [#allocation4], 256  }
  0x22   :  { %422 = vsyncadd [#allocation4], 4294967040 }
  0x23   :  { %423 = dma.done.wait [#allocation7], 192  }
  0x24   :  { %424 = vsyncadd [#allocation7], 4294967104  ;;  %v64_v0 = vld [vmem:[#allocation3] sm:$0xff]  ;;  %v65_v1 = vld [vmem:[#allocation3 + $0x8] sm:$0xff]  ;;  %vm85_vm0 = vcmask 1043456   ;;  %v430_v13 = vmov 0.0   ;;  %v106_v14 = vlaneseq }
  0x25   :  { %v77_v2 = vcombine.low %v64_v0, %v65_v1  ;;  %v306_v3 = vcombine.low %v65_v1, %v65_v1  ;;  %v78_v4 = vcombine.high %v64_v0, %v65_v1  ;;  %v307_v5 = vcombine.high %v65_v1, %v65_v1  ;;  %v96_v12 = vld [vmem:[#allocation6] sm:$0xf]  ;;  %317 = vmatprep.subr.mxu0 %v430_v13  ;;  %v195_v23 = vld [vmem:[#allocation8] sm:$0xff]  ;;  %v308_v24 = vld [vmem:[%s491_s2] ss:$0 sm:$0xff]  ;;  %s432_s2 = smov [#allocation9]  }
  0x26   :  { %vm431_vm1 = vmmov 0   ;;  %318 = vmatpush3.msk.msra.mxu0 %vm85_vm0, %v96_v12  ;;  %322 = vmatprep.subr.mxu1 %v430_v13  ;;  %v107_v15 = vand.u32 127, %v106_v14  ;;  %v109_v16 = vshrl.u32 %v106_v14, 7  ;;  %vm116_vm2 = vcmask 1041409   ;;  %v311_v29 = vld [vmem:[%s493_s4] ss:$0 sm:$0xff] }
  0x27   :  { %v86_v6 = vsel %vm85_vm0, %v77_v2, 0.0  ;;  %v87_v7 = vsel %vm85_vm0, %v306_v3, 0.0  ;;  %v91_v8 = vsel %vm85_vm0, %v78_v4, 0.0  ;;  %v92_v9 = vsel %vm85_vm0, %v307_v5, 0.0  ;;  %319 = vmatprep.mubr.msk.f32.mxu0 %vm431_vm1, %v430_v13  ;;  %324 = vmatprep.mubr.msk.f32.mxu1 %vm431_vm1, %v430_v13  ;;  %s296_s9 = sshll.u32 %s432_s2, 4  ;;  %s297_s9 = int_to_ptr.vmem [resolvable:$true] %s296_s9 }
  0x28   :  { %v88_v10 = vadd.f32 %v87_v7, %v86_v6  ;;  %v93_v11 = vadd.f32 %v92_v9, %v91_v8  ;;  %v110_v18 = vsub.s32 %v107_v15, %v109_v16  ;;  %vm118_vm3 = vcmask 31744   ;;  %323 = vmatpush3.msra.mxu1 %v195_v23  ;;  %s401_s4 = scalar_lea.vmem %s297_s9, 32  ;;  %p406_p2 = scmp.lt.s32.totalorder %s297_s9, %s297_s9 }
  0x29   :  { %vm203_vm4 = vcmask 64512   ;;  %vm277_vm5 = vcmask 58368   ;;  %p402_p1 = scmp.ne.s32.totalorder %s297_s9, %s401_s4  ;;  %p407_p3 = scmp.lt.s32.totalorder %s401_s4, %s401_s4 }
  0x2a   :  { %89 = vadd.xlane.f32.xlu0 %v88_v10 }
  0x2b   :  { %p408_p4 = por %p407_p3, %p406_p2 }
  0x2d   :  { %p409_p5 = pnand %p408_p4, %p402_p1 }
  0x2e   :  { %94 = vadd.xlane.f32.xlu0 %v93_v11 }
  0xb3   :  { %v90_v17 = vpop.xlane.xlu0 %89 }
  0xb4   :  { %v111_v20 = vrot.slane %v90_v17, %v110_v18 }
  0xb7   :  { %v95_v19 = vpop.xlane.xlu0 %94 }
  0xb8   :  { %v115_v21 = vrot.slane %v95_v19, %v110_v18 }
  0xba   :  { %v117_v22 = vsel %vm116_vm2, %v115_v21, %v111_v20 }
  0xbb   :  { %320 = vmatmul.mubr.msk.f32.vlgmr.msra.gmra.mxu0 %vm118_vm3, %v117_v22 }
 0x17b   :  { %v190_v25 = vpop.f32.mrf.mxu0 }
 0x17c   :  { %v191_v26 = vadd.f32 %v308_v24, %v190_v25 }
 0x17d   :  { %v321_v27 = vpop.f32.mrf.mxu0 }
 0x17e   :  { %v194_v28 = vmax.f32 %v191_v26, 0.0 }
 0x180   :  { %325 = vmatmul.mubr.msk.f32.vlgmr.msra.gmra.mxu1 %vm203_vm4, %v194_v28 }
 0x240   :  { %v273_v30 = vpop.f32.mrf.mxu1 }
 0x241   :  { %v274_v31 = vadd.f32 %v311_v29, %v273_v30 }
 0x242   :  { %v326_v32 = vpop.f32.mrf.mxu1 }
 0x243   :  { %v278_v33 = vsel %vm277_vm5, %v274_v31, -inf }
 0x244   :  { %279 = vmax.xlane.f32.xlu1 %v278_v33 }
 0x2cd   :  { %v280_v34 = vpop.xlane.xlu1 %279 }
 0x2ce   :  { %v281_v35 = vsub.f32 %v274_v31, %v280_v34 }
 0x2d0   :  { %v282_v36 = vmul.f32 1.442695, %v281_v35 }
 0x2d2   :  { %337 = vpow2.f32 %v282_v36 }
 0x2df   :  { %v338_v37 = vpop.eup %337 }
 0x2e0   :  { %v284_v38 = vsel %vm277_vm5, %v338_v37, 0.0 }
 0x2e1   :  { %285 = vadd.xlane.f32.xlu1 %v284_v38 }
 0x36a   :  { %v286_v39 = vpop.xlane.xlu1 %285 }
 0x36b   :  { %339 = vrcp.f32 %v286_v39 }
 0x378   :  { %v340_v40 = vpop.eup %339 }
 0x379   :  { %v288_v41 = vmul.f32 %v340_v40, %v338_v37 }
 0x37b   :  { %289 = vst.msk [vmem:[#allocation9] sm:$0x3] %vm277_vm5, %v288_v41 }
 0x37c   :  { %412 = shalt.err (!%p409_p5)
}
 0x37d   :  { %299 = dma.vmem_to_hbm [thread:$0]  %s297_s9, 32, %s494_s5, [#allocation5]  }
 0x37e   :  { %425 = dma.done.wait [#allocation5], 32  }
 0x37f   :  { %426 = vsyncadd [#allocation5], 4294967264 }
 0x380   :  { %303 = vsyncpa [#allocation4], 1 }
 0x381   :  { %304 = vsyncpa [#allocation7], 1 }
 0x382   :  { %305 = vsyncpa [#allocation5], 1 }

</bundles_post_ra>
